<compile_context>
chip_gen: v7x
topology: tpu7x:2x2x1
jax: 0.10.0
libtpu: 0.0.40
codegen_flags: <defaults>
</compile_context>

<pallas_src>
import functools

import jax
import jax.numpy as jnp
from jax.experimental import pallas as pl
from jax.experimental.pallas import tpu as pltpu


# --------------------------------------------------------------------------- #
# Kernels
# --------------------------------------------------------------------------- #
def conv_pool_kernel(patches_ref, wc_ref, bc_ref, pooled_ref, *,
                     n_rows, tile_s, mask_last):
    """One (Cf-tile, S-tile) step: bf16 matmul + bias + ReLU + pooled-sum accumulate.

    patches_ref: (B, TS, K_pad)  bf16 im2col patch tile
    wc_ref:      (K_pad, TCf)    bf16 stem conv weight tile
    bc_ref:      (1, TCf)        f32 stem conv bias tile
    pooled_ref:  (B, TCf)        f32 running pooled-sum (resident across S axis)
    """
    s = pl.program_id(1)

    @pl.when(s == 0)
    def _():
        pooled_ref[...] = jnp.zeros_like(pooled_ref)

    b, ts, kp = patches_ref.shape
    # Fold batch into the matmul M dim -> one large 2D MXU matmul, f32 accumulate.
    p2 = patches_ref[...].reshape(b * ts, kp)
    conv = jnp.dot(p2, wc_ref[...], preferred_element_type=jnp.float32)
    conv = jnp.maximum(conv + bc_ref[...], 0.0)                   # f32 VPU math
    conv = conv.reshape(b, ts, conv.shape[-1])

    if mask_last:
        # Only the final S tile contains zero-padded spatial rows; gate the
        # iota/compare/select behind it so every other step skips the mask.
        last = pl.num_programs(1) - 1

        @pl.when(s != last)
        def _():
            pooled_ref[...] += jnp.sum(conv, axis=1)

        @pl.when(s == last)
        def _():
            row = s * tile_s + jax.lax.broadcasted_iota(jnp.int32, (ts, 1), 0)
            masked = jnp.where(row < n_rows, conv, 0.0)
            pooled_ref[...] += jnp.sum(masked, axis=1)
    else:
        pooled_ref[...] += jnp.sum(conv, axis=1)


def head_kernel(pooled_ref, we_ref, be_ref, gamma_ref, beta_ref, out_ref):
    """Linear(Cf->E) + BatchNorm1d (training batch stats, biased var, eps=1e-5).

    The 1/S global-average-pool scale is pre-folded into we_ref by the wrapper.
    """
    emb = jnp.dot(pooled_ref[...], we_ref[...],
                  preferred_element_type=jnp.float32) + be_ref[...]
    mean = jnp.mean(emb, axis=0, keepdims=True)
    var = jnp.mean((emb - mean) ** 2, axis=0, keepdims=True)      # biased variance
    normed = (emb - mean) * jax.lax.rsqrt(var + 1e-5)
    out_ref[...] = normed * gamma_ref[...] + beta_ref[...]


# --------------------------------------------------------------------------- #
# Helpers
# --------------------------------------------------------------------------- #
def _round_up(x, m):
    return (x + m - 1) // m * m


def _pad2d(x, rows, cols):
    return jnp.pad(x, ((0, rows - x.shape[0]), (0, cols - x.shape[1])))


def _full_spec(x):
    """Whole-array block (legal: block == full array dims)."""
    nd = x.ndim
    return pl.BlockSpec(x.shape, lambda *_, nd=nd: (0,) * nd)


def _vmem_capacity_bytes():
    try:
        info = pltpu.get_tpu_info()
        for name in ("vmem_capacity_bytes", "vmem_bytes", "vmem_size_bytes"):
            v = getattr(info, name, None)
            if v:
                return int(v)
    except Exception:
        pass
    return 64 << 20  # conservative fallback (v7x per-TC VMEM)


def _stage1_vmem_bytes(b, ts, tcf, k_pad):
    patches = 2 * b * ts * k_pad * 2       # double-buffered bf16 patch tile
    weight = 2 * k_pad * tcf * 2           # double-buffered bf16 weight tile
    out = 2 * b * tcf * 4                  # pooled f32 accumulator block
    temp = 2 * b * ts * tcf * 4            # materialized f32 conv temp (+slack)
    return patches + weight + out + temp


def _pick_tiles(b, s_rows, k_pad, cf_pad, budget, tile_s_req):
    """Pick (tile_s, tile_cf).  tile_cf is the HBM-reuse lever: prefer the
    largest value, ideally Cf_pad//2 so the 'parallel' Cf axis has >= 2 tiles
    (v7x megacore) while patches stream only twice."""
    cf_align = 256 if cf_pad % 256 == 0 else 128
    half = cf_pad // 2
    pref = half if (half >= cf_align and half % cf_align == 0) else cf_pad
    divisors = [c for c in range(cf_pad, cf_align - 1, -cf_align) if cf_pad % c == 0]
    cf_candidates = [pref] + [c for c in divisors if c < pref]

    if tile_s_req is not None:
        ts0 = max(16, _round_up(tile_s_req, 16))
    else:
        ts0 = max(16, min(512, _round_up(s_rows, 16)))

    for tcf in cf_candidates:
        ts = ts0
        while True:
            if _stage1_vmem_bytes(b, ts, tcf, k_pad) <= budget:
                return ts, tcf
            if ts <= 16:
                break
            ts = max(16, (ts // 2) // 16 * 16)   # shrink tile_s first (keeps reuse)
    return 16, cf_candidates[-1]


# --------------------------------------------------------------------------- #
# Forward pass
# --------------------------------------------------------------------------- #
def encoder_cnn_forward(images_nchw, params, *, tile_s=None):
    """images_nchw: (B, Cin, H, W) float32 -> (B, embed_size) float32."""
    wc, bc, we, be, gamma, beta = (params[k] for k in
                                   ("wc", "bc", "we", "be", "gamma", "beta"))
    B, Cin, H, W = images_nchw.shape
    k, stride, pad = 7, 2, 3
    Ho = (H + 2 * pad - k) // stride + 1
    Wo = (W + 2 * pad - k) // stride + 1
    S = Ho * Wo
    K = k * k * Cin
    Cf = wc.shape[1]
    E = we.shape[1]

    # --- alignment padding: K to 256 (MXU contraction), Cf / E to 128 lanes ---
    K_pad = _round_up(K, 256)
    Cf_pad = _round_up(Cf, 128)
    E_pad = _round_up(E, 128)

    # --- generation-aware VMEM budget & tile selection ---------------------- #
    vmem_bytes = _vmem_capacity_bytes()
    vmem_limit = int(vmem_bytes * 0.75)
    budget = int(vmem_bytes * 0.55)          # headroom for compiler scratch
    tile_s, tile_cf = _pick_tiles(B, S, K_pad, Cf_pad, budget, tile_s)
    S_pad = _round_up(S, tile_s)
    mask_last = S_pad != S

    # --- glue: NCHW -> NHWC, pad, bf16 cast, im2col (pure reshaping) -------- #
    x = jnp.transpose(images_nchw, (0, 2, 3, 1))                  # (B, H, W, Cin)
    xp = jnp.pad(x, ((0, 0), (pad, pad), (pad, pad), (0, 0)))
    xp = xp.astype(jnp.bfloat16)             # build patches directly in bf16
    cols = []
    for di in range(k):
        for dj in range(k):
            cols.append(xp[:, di:di + stride * Ho:stride,
                           dj:dj + stride * Wo:stride, :])        # (B, Ho, Wo, Cin)
    patches = jnp.stack(cols, axis=3)                             # (B, Ho, Wo, k*k, Cin)
    patches = patches.reshape(B, S, K)
    patches = jnp.pad(patches, ((0, 0), (0, S_pad - S), (0, K_pad - K)))

    wc_p = _pad2d(wc, K_pad, Cf_pad).astype(jnp.bfloat16)
    bc_p = _pad2d(bc, 1, Cf_pad).astype(jnp.float32)
    # Fold the 1/S global-average-pool scale into the head weight.
    we_p = (_pad2d(we, Cf_pad, E_pad) * (1.0 / S)).astype(jnp.float32)
    be_p = _pad2d(be, 1, E_pad).astype(jnp.float32)
    gamma_p = _pad2d(gamma, 1, E_pad).astype(jnp.float32)
    beta_p = _pad2d(beta, 1, E_pad).astype(jnp.float32)

    grid = (Cf_pad // tile_cf, S_pad // tile_s)   # (parallel, arbitrary/reduction)

    # --- stage 1: streamed conv-as-matmul + ReLU + pooled-sum accumulation -- #
    pooled_sum = pl.pallas_call(
        functools.partial(conv_pool_kernel,
                          n_rows=S, tile_s=tile_s, mask_last=mask_last),
        out_shape=jax.ShapeDtypeStruct((B, Cf_pad), jnp.float32),
        grid_spec=pltpu.PrefetchScalarGridSpec(
            num_scalar_prefetch=0,
            grid=grid,
            in_specs=[
                pl.BlockSpec((B, tile_s, K_pad), lambda c, s: (0, s, 0)),
                pl.BlockSpec((K_pad, tile_cf), lambda c, s: (0, c)),
                pl.BlockSpec((1, tile_cf), lambda c, s: (0, c)),
            ],
            out_specs=pl.BlockSpec((B, tile_cf), lambda c, s: (0, c)),
        ),
        compiler_params=pltpu.CompilerParams(
            dimension_semantics=("parallel", "arbitrary"),
            vmem_limit_bytes=vmem_limit,
        ),
    )(patches, wc_p, bc_p)

    # --- stage 2: tiny full-batch Linear + BatchNorm1d (whole-batch stats) -- #
    head_args = (pooled_sum, we_p, be_p, gamma_p, beta_p)
    out_pad = pl.pallas_call(
        head_kernel,
        out_shape=jax.ShapeDtypeStruct((B, E_pad), jnp.float32),
        in_specs=[_full_spec(a) for a in head_args],
        out_specs=pl.BlockSpec((B, E_pad), lambda: (0, 0)),
        compiler_params=pltpu.CompilerParams(vmem_limit_bytes=vmem_limit),
    )(*head_args)

    return out_pad[:, :E]


def init_params(key, cin, cfeat, embed_size, k=7):
    """Deterministic synthetic parameters (shapes follow the module's __init__)."""
    k1, k2, k3, _ = jax.random.split(key, 4)
    K = k * k * cin
    wc = jax.random.normal(k1, (K, cfeat), jnp.float32) / jnp.sqrt(K)
    bc = jnp.zeros((1, cfeat), jnp.float32)
    we = (jax.random.normal(k2, (cfeat, embed_size), jnp.float32)
          / jnp.sqrt(cfeat))                                       # Linear(2048->E) analogue
    be = 0.01 * jax.random.normal(k3, (1, embed_size), jnp.float32)
    gamma = jnp.ones((1, embed_size), jnp.float32)                 # BatchNorm1d weight init
    beta = jnp.zeros((1, embed_size), jnp.float32)                 # BatchNorm1d bias init
    return dict(wc=wc, bc=bc, we=we, be=be, gamma=gamma, beta=beta)


if __name__ == "__main__":
    B, Cin, H, W = 2, 3, 16, 16
    CFEAT = 512          # stand-in for resnet.fc.in_features (=2048 at full scale)
    EMBED = 32

    key = jax.random.PRNGKey(0)
    kimg, kparam = jax.random.split(key)
    images = jax.random.normal(kimg, (B, Cin, H, W), jnp.float32)
    params = init_params(kparam, Cin, CFEAT, EMBED)

    # tile_s=48: S=64 -> S_pad=96, 2 S steps (exercises the accumulator AND the
    # gated last-tile spatial mask); CFEAT=512 -> Cf_pad=512 with tile_cf=256,
    # exercising the 2-wide 'parallel' Cf axis.
    feats = encoder_cnn_forward(images, params, tile_s=48)
    jax.block_until_ready(feats)
    assert feats.shape == (B, EMBED) and feats.dtype == jnp.float32
    assert bool(jnp.all(jnp.isfinite(feats)))
    print("KERNEL_OK")
</pallas_src>

<mosaic_0001>
module attributes {stable_mosaic.version = 11 : i64} {
  func.func @conv_pool_kernel(%arg0: i32, %arg1: i32, %arg2: memref<2x48x256xbf16, #tpu.memory_space<vmem>>, %arg3: memref<256x256xbf16, #tpu.memory_space<vmem>>, %arg4: memref<1x256xf32, #tpu.memory_space<vmem>>, %arg5: memref<2x256xf32, #tpu.memory_space<vmem>>) attributes {dimension_semantics = [#tpu.dimension_semantics<parallel>, #tpu.dimension_semantics<arbitrary>], iteration_bounds = array<i64: 2, 2>, scalar_prefetch = 0 : i64, scratch_operands = 0 : i64, tpu.core_type = #tpu.core_type<tc>, window_params = [{transform_indices = @transform_0, window_bounds = array<i64: 2, 48, 256>}, {transform_indices = @transform_1, window_bounds = array<i64: 256, 256>}, {transform_indices = @transform_2, window_bounds = array<i64: 1, 256>}, {transform_indices = @transform_3, window_bounds = array<i64: 2, 256>}]} {
    %c0_i32 = arith.constant 0 : i32
    %0 = arith.cmpi eq, %arg1, %c0_i32 : i32
    %1 = arith.extui %0 : i1 to i32
    %c0_i32_0 = arith.constant 0 : i32
    %2 = arith.cmpi ne, %1, %c0_i32_0 : i32
    scf.if %2 {
      %cst_11 = arith.constant 0.000000e+00 : f32
      %19 = vector.broadcast %cst_11 : f32 to vector<2x256xf32>
      %c0_12 = arith.constant 0 : index
      %c0_13 = arith.constant 0 : index
      %20 = vector.load %arg5[%c0_12, %c0_13] : memref<2x256xf32, #tpu.memory_space<vmem>>, vector<2x256xf32>
      tpu.vector_store %arg5[%c0_12, %c0_13], %19 {strides = array<i32>} : memref<2x256xf32, #tpu.memory_space<vmem>>, vector<2x256xf32>,
    } else {
    }
    %c0 = arith.constant 0 : index
    %c0_1 = arith.constant 0 : index
    %c0_2 = arith.constant 0 : index
    %3 = vector.load %arg2[%c0, %c0_1, %c0_2] : memref<2x48x256xbf16, #tpu.memory_space<vmem>>, vector<2x48x256xbf16>
    %4 = vector.shape_cast %3 : vector<2x48x256xbf16> to vector<96x256xbf16>
    %c0_3 = arith.constant 0 : index
    %c0_4 = arith.constant 0 : index
    %5 = vector.load %arg3[%c0_3, %c0_4] : memref<256x256xbf16, #tpu.memory_space<vmem>>, vector<256x256xbf16>
    %cst = arith.constant dense<0.000000e+00> : vector<96x256xf32>
    %6 = tpu.matmul %4, %5, %cst {dimension_numbers = #tpu.dot_dimension_numbers<[1], [0], [0], [1], [0, 0, 1, 1], [], []>} : vector<96x256xbf16>, vector<256x256xbf16>, vector<96x256xf32> -> vector<96x256xf32>
    %c0_5 = arith.constant 0 : index
    %c0_6 = arith.constant 0 : index
    %7 = vector.load %arg4[%c0_5, %c0_6] : memref<1x256xf32, #tpu.memory_space<vmem>>, vector<1x256xf32>
    %8 = vector.broadcast %7 : vector<1x256xf32> to vector<96x256xf32>
    %9 = arith.addf %6, %8 : vector<96x256xf32>
    %cst_7 = arith.constant 0.000000e+00 : f32
    %10 = vector.broadcast %cst_7 : f32 to vector<96x256xf32>
    %11 = arith.maximumf %9, %10 : vector<96x256xf32>
    %12 = vector.shape_cast %11 : vector<96x256xf32> to vector<2x48x256xf32>
    %c1_i32 = arith.constant 1 : i32
    %13 = arith.cmpi ne, %arg1, %c1_i32 : i32
    %14 = arith.extui %13 : i1 to i32
    %c0_i32_8 = arith.constant 0 : i32
    %15 = arith.cmpi ne, %14, %c0_i32_8 : i32
    scf.if %15 {
      %c0_11 = arith.constant 0 : index
      %c0_12 = arith.constant 0 : index
      %19 = vector.load %arg5[%c0_11, %c0_12] : memref<2x256xf32, #tpu.memory_space<vmem>>, vector<2x256xf32>
      %cst_13 = arith.constant dense<0.000000e+00> : vector<2x256xf32>
      %20 = vector.multi_reduction <add>, %12, %cst_13 [1] : vector<2x48x256xf32> to vector<2x256xf32>
      %21 = arith.addf %19, %20 : vector<2x256xf32>
      %c0_14 = arith.constant 0 : index
      %c0_15 = arith.constant 0 : index
      %22 = vector.load %arg5[%c0_14, %c0_15] : memref<2x256xf32, #tpu.memory_space<vmem>>, vector<2x256xf32>
      tpu.vector_store %arg5[%c0_14, %c0_15], %21 {strides = array<i32>} : memref<2x256xf32, #tpu.memory_space<vmem>>, vector<2x256xf32>,
    } else {
    }
    %c1_i32_9 = arith.constant 1 : i32
    %16 = arith.cmpi eq, %arg1, %c1_i32_9 : i32
    %17 = arith.extui %16 : i1 to i32
    %c0_i32_10 = arith.constant 0 : i32
    %18 = arith.cmpi ne, %17, %c0_i32_10 : i32
    scf.if %18 {
      %c48_i32 = arith.constant 48 : i32
      %19 = arith.muli %arg1, %c48_i32 : i32
      %20 = tpu.iota {dimensions = array<i32: 0>} : vector<48x1xi32>
      %21 = vector.broadcast %19 : i32 to vector<48x1xi32>
      %22 = arith.addi %21, %20 : vector<48x1xi32>
      %c64_i32 = arith.constant 64 : i32
      %23 = vector.broadcast %c64_i32 : i32 to vector<48x1xi32>
      %24 = arith.cmpi slt, %22, %23 : vector<48x1xi32>
      %cst_11 = arith.constant 0.000000e+00 : f32
      %25 = vector.shape_cast %24 : vector<48x1xi1> to vector<1x48x1xi1>
      %26 = vector.broadcast %25 : vector<1x48x1xi1> to vector<2x48x256xi1>
      %27 = vector.broadcast %cst_11 : f32 to vector<2x48x256xf32>
      %28 = arith.select %26, %12, %27 : vector<2x48x256xi1>, vector<2x48x256xf32>
      %c0_12 = arith.constant 0 : index
      %c0_13 = arith.constant 0 : index
      %29 = vector.load %arg5[%c0_12, %c0_13] : memref<2x256xf32, #tpu.memory_space<vmem>>, vector<2x256xf32>
      %cst_14 = arith.constant dense<0.000000e+00> : vector<2x256xf32>
      %30 = vector.multi_reduction <add>, %28, %cst_14 [1] : vector<2x48x256xf32> to vector<2x256xf32>
      %31 = arith.addf %29, %30 : vector<2x256xf32>
      %c0_15 = arith.constant 0 : index
      %c0_16 = arith.constant 0 : index
      %32 = vector.load %arg5[%c0_15, %c0_16] : memref<2x256xf32, #tpu.memory_space<vmem>>, vector<2x256xf32>
      tpu.vector_store %arg5[%c0_15, %c0_16], %31 {strides = array<i32>} : memref<2x256xf32, #tpu.memory_space<vmem>>, vector<2x256xf32>,
    } else {
    }
    return
  }
  func.func @transform_0(%arg0: i32, %arg1: i32) -> (i32, i32, i32) {
    %c0_i32 = arith.constant 0 : i32
    %c0_i32_0 = arith.constant 0 : i32
    %c0_i32_1 = arith.constant 0 : i32
    return %c0_i32, %arg1, %c0_i32_0 : i32, i32, i32
  }
  func.func @transform_1(%arg0: i32, %arg1: i32) -> (i32, i32) {
    %c0_i32 = arith.constant 0 : i32
    %c0_i32_0 = arith.constant 0 : i32
    return %c0_i32, %arg0 : i32, i32
  }
  func.func @transform_2(%arg0: i32, %arg1: i32) -> (i32, i32) {
    %c0_i32 = arith.constant 0 : i32
    %c0_i32_0 = arith.constant 0 : i32
    return %c0_i32, %arg0 : i32, i32
  }
  func.func @transform_3(%arg0: i32, %arg1: i32) -> (i32, i32) {
    %c0_i32 = arith.constant 0 : i32
    %c0_i32_0 = arith.constant 0 : i32
    return %c0_i32, %arg0 : i32, i32
  }
}

</mosaic_0001>

<bundles_post_ra>
// kernel: tpu_custom_call.1
= control target key start
LH: loop header
LB: loop body
LE: loop exit
PB: predicated region body
PF: predicated region fallthrough
CT: control target
= control target key end

     0   :  { %s2057_s0 = inlined_call_operand.hbm [shape: bf16[2,96,256], index: 0, kind: input, shape index: {}]   ;;  %s2058_s1 = inlined_call_operand.hbm [shape: bf16[256,512], index: 1, kind: input, shape index: {}]   ;;  %s2059_s2 = inlined_call_operand.vmem [shape: f32[1,512], index: 2, kind: input, shape index: {}]   ;;  %s2060_s3 = inlined_call_operand.hbm [shape: f32[2,512], index: 3, kind: output, shape index: {}]  }
   0x1   :  { %2081 = sst [smem:[#allocation22_spill]] %s2057_s0 }
   0x2   :  { %8 = vsyncpa [#allocation3], 0 }
   0x3   :  { %10 = vsyncpa [#allocation3 + $0x1], 0 }
   0x4   :  { %11 = vsyncpa [#allocation6], 0 }
   0x5   :  { %13 = vsyncpa [#allocation6 + $0x1], 0 }
   0x6   :  { %14 = vsyncpa [#allocation4], 0 }
   0x7   :  { %16 = vsyncpa [#allocation4 + $0x1], 0  ;;  %s1522_s12 = smov 0   ;;  %s1524_s13 = smov 0  }
   0x8   :  { %s1526_s14 = smov 0   ;;  %s1528_s15 = smov 0  }
   0x9   :  { %s1530_s16 = smov 0   ;;  %s1532_s17 = smov 0  }
   0xa   :  { %s1534_s18 = smov 0   ;;  %s1536_s19 = smov 0  }
   0xb   :  { %s1538_s20 = smov 0   ;;  %s1540_s21 = smov 0  }
   0xc   :  { %s1542_s22 = smov 0  }
   0xd LB: > { %2082 = sst [smem:[#allocation14_spill]] %s1446_s12  ;;  %s1042_s23 = sadd.s32 4294967295, %s1486_s22   ;;  %s1486_s22 = sphi %s1542_s22, %s22_s22   ;;  %s1482_s21 = sphi %s1540_s21, %s2126_s21   ;;  %s1478_s20 = sphi %s1538_s20, %s2118_s20   ;;  %s1474_s19 = sphi %s1536_s19, %s2125_s19   ;;  %s1470_s18 = sphi %s1534_s18, %s2117_s18   ;;  %s1466_s17 = sphi %s1532_s17, %s2116_s17   ;;  %s1462_s16 = sphi %s1530_s16, %s2124_s16   ;;  %s1458_s15 = sphi %s1528_s15, %s2123_s15   ;;  %s1454_s14 = sphi %s1526_s14, %s2122_s14   ;;  %s1450_s13 = sphi %s1524_s13, %s2121_s13   ;;  %s1446_s12 = sphi %s1522_s12, %s2120_s12  }
   0xe   : > { %2083 = sst [smem:[#allocation15_spill]] %s1466_s17  ;;  %s1043_s24 = sadd.s32 4294967294, %s1486_s22  }
   0xf   : > { %2084 = sst [smem:[#allocation16_spill]] %s1478_s20  ;;  %s31_s25 = sadd.s32 1, %s1478_s20 }
  0x10   : > { %s34_s26 = sadd.s32 1, %s1482_s21  ;;  %p32_p0 = scmp.ge.s32.totalorder %s31_s25, 2 }
  0x11   : > { %s41_s27 = sadd.s32 1, %s1466_s17  ;;  %p48_p1 = scmp.ne.s32.totalorder %s1466_s17, %s1462_s16 }
  0x12   : > { %p49_p2 = scmp.eq.s32.totalorder %s1486_s22, 0  ;;  %s2128_s25 = smov (%p32_p0, %s31_s25), 0 }
  0x13   : > { %2085 = sst [smem:[#allocation17_spill]] %s2128_s25  ;;  %s2130_s26 = smov (!%p32_p0, %s34_s26), %s1482_s21 }
  0x14   : > { %s38_s28 = ssub.s32 %s1478_s20, %s2128_s25  ;;  %p1590_p3 = por %p49_p2, %p48_p1 }
  0x15   : > { %p36_p4 = scmp.ge.s32.totalorder %s2130_s26, 2  ;;  %p39_p5 = scmp.eq.s32.totalorder %s38_s28, 0 }
  0x16   : > { %p54_p6 = scmp.ne.s32.totalorder %s1462_s16, %s1458_s15  ;;  %p55_p7 = scmp.eq.s32.totalorder %s1042_s23, 0 }
  0x17   : > { %s2132_s26 = smov (%p36_p4, %s2130_s26), 0  ;;  %s67_s6 = sadd.s32 1, %s1454_s14 }
  0x18   : > { %2087 = sst [smem:[#allocation18_spill]] %s2132_s26  ;;  %p1600_p8 = por %p55_p7, %p54_p6 }
  0x19   : > { %s1598_s30 = scalar_select %p39_p5, %s1466_s17, %s41_s27  }
  0x1a   : > { %s64_s5 = ssub.s32 %s1482_s21, %s2132_s26  ;;  %p74_p10 = scmp.ne.s32.totalorder %s1454_s14, %s1450_s13 }
  0x1b   : > { %2088 = sst [smem:[#allocation19_spill]] %s1598_s30  ;;  %p65_p9 = scmp.eq.s32.totalorder %s64_s5, 0 }
  0x1c   : > { %p80_p11 = scmp.ne.s32.totalorder %s1450_s13, %s1446_s12  ;;  %p1616_p12 = por %p74_p10, %p49_p2 }
  0x1d   : > { %s1612_s7 = scalar_select %p65_p9, %s1454_s14, %s67_s6  }
  0x1e   : > { %p1620_p13 = por %p80_p11, %p55_p7  ;;  %p130_p0 = scmp.eq.s32.totalorder %s1042_s23, 3 }
  0x1f   : > { %2090 = sst [smem:[#allocation20_spill]] %s1612_s7  ;;  %p136_p1 = scmp.eq.s32.totalorder %s1043_s24, 3 }
  0x20   : > { %s2092_s9 = scalar_select %p1620_p13, 1, 0 }
  0x21   : > { %p1624_p4 = por %p130_p0, %p74_p10  ;;  %p1628_p5 = por %p136_p1, %p80_p11 }
  0x22   : > { %p1045_p6 = scmp.ge.s32.totalorder %s1486_s22, 4 }
  0x23   : > { %s2093_s10 = scalar_select %p1624_p4, 1, 0 }
  0x24   : > { %s2094_s11 = scalar_select %p1628_p5, 1, 0 }
  0x25   : > { %152 = sbr.rel (%p1045_p6) target bundleno = 85 (0x55), region = 16 }
  0x26   : > { %2095 = sst [smem:[#allocation21_spill]] %s2094_s11 }
  0x2c   : > { %s156_s15 = sand.u32 1, %s1466_s17   ;;  %s1113_s23 = smul.u32 768, %s1478_s20 }
  0x2d   : > { %s1146_s24 = smul.u32 96, %s156_s15  ;;  %s1488_s27 = smov 1536  }
  0x2e   : > { %1149 = sst [smem:[#allocation9]] (%p1590_p3), %s1488_s27  ;;  %s1489_s11 = smov 768  }
  0x2f   : > { %s1148_s28 = scalar_select %p1590_p3, [#allocation0], [#allocation10] }
  0x30   : > { %s2096_s0 = sld [smem:[#allocation22_spill]]  ;;  %s160_s30 = scalar_lea.vmem [#allocation2], %s1146_s24 }
  0x31   : > { %s172_s25 = sld [smem:[%s1148_s28]]   ;;  %s180_s7 = sshll.u32 %s160_s30, 4  ;;  %s181_s7 = int_to_ptr.vmem [resolvable:$true] %s180_s7 }
  0x32   : > { %1150 = sst [smem:[#allocation9 + $0x1]] (%p1590_p3), %s1489_s11  ;;  %s1490_s20 = smov 6  }
  0x33   : > { %1151 = sst [smem:[#allocation9 + $0x2]] (%p1590_p3), %s1490_s20  ;;  %s1491_s17 = smov 128  }
  0x34   : > { %1152 = sst [smem:[#allocation9 + $0x3]] (%p1590_p3), %s1491_s17  ;;  %s1492_s27 = smov 8  }
  0x35   : > { %1153 = sst [smem:[#allocation9 + $0x4]] (%p1590_p3), %s1491_s17  ;;  %s157_s24 = scalar_lea.sflag [#allocation3], %s156_s15 }
  0x36   : > { %s167_s26 = scalar_lea.hbm %s2096_s0, %s1113_s23  ;;  %1154 = sst [smem:[#allocation9 + $0x5]] (%p1590_p3), %s1492_s27 }
  0x37   : > { %s1048_s23 = sshll.u32 %s172_s25, 26  ;;  %s1493_s5 = smov [#allocation8]  }
  0x38   : > { %s1049_s28 = sadd.s32 134217728, %s1048_s23  ;;  %s203_s30 = sand.u32 1, %s1454_s14  }
  0x39   : > { %1155 = dma.general (%p1590_p3), %s167_s26, 1536, %s181_s7, %s157_s24, %s1493_s5, [#allocation9], %s1049_s28, 0  }
  0x3a   : > { %s1111_s20 = sshll.u32 %s1482_s21, 7  ;;  %s1050_s11 = sshll.u32 %s203_s30, 8 }
  0x3b   : > { %s1659_s12 = scalar_lea.hbm %s2058_s1, %s1111_s20  ;;  %s207_s17 = scalar_lea.vmem [#allocation5], %s1050_s11 }
  0x3c   : > { %s214_s25 = sshll.u32 %s207_s17, 4  ;;  %s1663_s26 = scalar_lea.sflag [#allocation6], %s203_s30  ;;  %s1661_s25 = int_to_ptr.vmem [resolvable:$true] %s214_s25 }
  0x3d   : > { %s1332_s29 = scalar_lea.hbm %s1659_s12, 4096  ;;  %s1336_s0 = scalar_lea.hbm %s2058_s1, 8192 }
  0x3e   : > { %p1333_p2 = scmp.ne.s32.totalorder %s1659_s12, %s1332_s29  ;;  %p1337_p9 = scmp.lt.u32.totalorder %s1659_s12, %s2058_s1 }
  0x3f   : > { %p1338_p10 = scmp.lt.u32.totalorder %s1336_s0, %s1332_s29  ;;  %p1340_p0 = scmp.lt.u32.totalorder %s1332_s29, %s1659_s12 }
  0x40   : > { %p1334_p3 = pnand %p1333_p2, %p1616_p12 }
  0x41   : > { %p1339_p11 = por %p1338_p10, %p1337_p9 }
  0x42   : > { %p1335_p7 = pneg %p1334_p3 }
  0x43   : > { %p1341_p1 = por %p1340_p0, %p1339_p11 }
  0x45   : > { %p1342_p6 = pnand %p1341_p1, %p1335_p7 }
  0x47   : > { %1345 = shalt.err (!%p1342_p6)
}
  0x48   : > { %s1346_s28 = scalar_lea.vmem %s1661_s25, 4096  ;;  %s1494_s24 = smov [#allocation5]  }
  0x49   : > { %p1347_p2 = scmp.ne.s32.totalorder %s1661_s25, %s1346_s28  ;;  %s1350_s5 = sshll.u32 %s1494_s24, 4  ;;  %s1351_s5 = int_to_ptr.vmem [resolvable:$false] %s1350_s5 }
  0x4a   : > { %s1352_s30 = scalar_lea.vmem %s1351_s5, 8192  ;;  %p1353_p4 = scmp.lt.s32.totalorder %s1661_s25, %s1351_s5 }
  0x4b   : > { %p1348_p3 = pnand %p1347_p2, %p1616_p12  ;;  %p1354_p13 = scmp.lt.s32.totalorder %s1352_s30, %s1346_s28 }
  0x4d   : > { %p1349_p5 = pneg %p1348_p3  ;;  %p1355_p9 = por %p1354_p13, %p1353_p4 }
  0x4f   : > { %p1356_p10 = pnand %p1355_p9, %p1349_p5 }
  0x51   : > { %1359 = shalt.err (!%p1356_p10)
}
  0x52   : > { %s1495_s20 = smov 256   ;;  %s1496_s11 = smov 128  }
  0x53   : > { %s1497_s6 = smov 8  }
  0x54   : > { %1156 = dma.hbm_to_vmem [thread:$0]  (%p1616_p12), %s1659_s12, 4096, %s1661_s25, %s1663_s26, %s1495_s20, %s1496_s11, %s1497_s6  }
  0x55 PF: > { %p1053_p7 = scmp.ge.s32.totalorder %s1486_s22, 1  ;;  %p230_p11 = scmp.lt.s32.totalorder %s1486_s22, 5 }
  0x57   : > { %p231_p0 = pnand %p1053_p7, %p230_p11 }
  0x58   : > { %s236_s17 = sand.u32 (!%p231_p0), 1, %s1462_s16  }
  0x59   : > { %234 = sbr.rel (%p231_p0) target bundleno = 515 (0x203), region = 32  ;;  %s237_s7 = scalar_lea.sflag (!%p231_p0), [#allocation3], %s236_s17 }
  0x5a   : > { %s1147_s29 = smul.u32 (!%p231_p0), 96, %s236_s17 }
  0x5c   : > { %s1690_s15 = scalar_lea.vmem (!%p231_p0), [#allocation2], %s1147_s29 }
  0x60   : > { %1433 = dma.done.wait (%p1600_p8), %s237_s7, 1536  }
  0x61   : > { %1435 = vsyncadd (%p1600_p8), %s237_s7, 4294965760  ;;  %s1697_s12 = sand.u32 1, %s1450_s13   ;;  %p2097_p12 = scmp.ne.s32.totalorder %s2092_s9, 0 }
  0x62   : > { %s1054_s8 = sshll.u32 %s1697_s12, 8  ;;  %s246_s25 = scalar_lea.sflag [#allocation6], %s1697_s12 }
  0x63   : > { %s1701_s26 = scalar_lea.vmem [#allocation5], %s1054_s8 }
  0x64   : > { %1437 = dma.done.wait (%p2097_p12), %s246_s25, 4096  }
  0x65   : > { %1439 = vsyncadd (%p2097_p12), %s246_s25, 4294963200  ;;  %s1055_s0 = sshll.u32 %s1697_s12, 2  ;;  %s1056_s4 = sshll.u32 %s1474_s19, 1 }
  0x66   : > { %p284_p8 = scmp.lt.s32.totalorder %s1056_s4, 3  ;;  %s1715_s24 = scalar_lea.vmem [#allocation7], %s1055_s0 }
  0x67   : > { %p1057_p13 = scmp.ne.s32.totalorder %s1470_s18, 0 }
  0x68   : > { %s2134_s4 = smov (!%p284_p8, %s1056_s4), 3  ;;  %v1498_v0 = vmov (!%p1057_p13), 0.0  }
  0x69   : > { %s286_s28 = scalar_lea.vmem %s2059_s2, %s2134_s4  ;;  %292 = sbr.rel (%p1057_p13) target bundleno = 112 (0x70), region = 44  ;;  %293 = vst [vmem:[%s1715_s24] sm:$0xf] (!%p1057_p13), %v1498_v0 }
  0x70 PF: > { %v1266_v1 = vld [vmem:[%s1701_s26 + $0x4] ss:$8 sps:$4 sm:$0xff]   ;;  %v1268_v2 = vld [vmem:[%s1701_s26] ss:$8 sps:$4 sm:$0xff]   ;;  %v1269_v3 = vld [vmem:[%s1701_s26 + $0x14] ss:$8 sps:$4 sm:$0xff]   ;;  %v340_v45 = vlaneseq }
  0x71   : > { %570 = vmatprep.subr.bf16.mxu0 %v1266_v1  ;;  %1114 = vmatprep.subr.bf16.mxu1 %v1266_v1  ;;  %v1271_v4 = vld [vmem:[%s1701_s26 + $0x10] ss:$8 sps:$4 sm:$0xff]   ;;  %v1272_v5 = vld [vmem:[%s1701_s26 + $0x24] ss:$8 sps:$4 sm:$0xff]   ;;  %v1274_v6 = vld [vmem:[%s1701_s26 + $0x20] ss:$8 sps:$4 sm:$0xff]  }
  0x72   : > { %571 = vmatpush1.bf16.msra.mxu0 %v1268_v2  ;;  %1130 = vmatpush1.bf16.msra.mxu1 %v1268_v2  ;;  %v1275_v7 = vld [vmem:[%s1701_s26 + $0x34] ss:$8 sps:$4 sm:$0xff]   ;;  %v1277_v8 = vld [vmem:[%s1701_s26 + $0x30] ss:$8 sps:$4 sm:$0xff]   ;;  %v1278_v9 = vld [vmem:[%s1701_s26 + $0x44] ss:$8 sps:$4 sm:$0xff]  }
  0x73   : > { %572 = vmatprep.subr.bf16.mxu0 %v1269_v3  ;;  %1115 = vmatprep.subr.bf16.mxu1 %v1269_v3  ;;  %v1280_v10 = vld [vmem:[%s1701_s26 + $0x40] ss:$8 sps:$4 sm:$0xff]   ;;  %v1281_v11 = vld [vmem:[%s1701_s26 + $0x54] ss:$8 sps:$4 sm:$0xff]   ;;  %v1283_v12 = vld [vmem:[%s1701_s26 + $0x50] ss:$8 sps:$4 sm:$0xff]  }
  0x74   : > { %v1284_v13 = vld [vmem:[%s1701_s26 + $0x64] ss:$8 sps:$4 sm:$0xff]   ;;  %v1286_v15 = vld [vmem:[%s1701_s26 + $0x60] ss:$8 sps:$4 sm:$0xff]   ;;  %v1319_v16 = vld [vmem:[%s1690_s15 + $0x34] ss:$8 sps:$4 sm:$0xff]  }
  0x75   : > { %v1316_v14 = vld [vmem:[%s1690_s15 + $0x4] ss:$8 sps:$4 sm:$0xff]   ;;  %v1287_v17 = vld [vmem:[%s1701_s26 + $0x74] ss:$8 sps:$4 sm:$0xff]   ;;  %632 = vmatprep.mubr.bf16.mxu1 %v1319_v16  ;;  %v1289_v18 = vld [vmem:[%s1701_s26 + $0x70] ss:$8 sps:$4 sm:$0xff]  }
  0x76   : > { %573 = vmatpush1.bf16.msra.mxu0 %v1271_v4  ;;  %1131 = vmatpush1.bf16.msra.mxu1 %v1271_v4  ;;  %v1290_v19 = vld [vmem:[%s1701_s26 + $0x84] ss:$8 sps:$4 sm:$0xff]   ;;  %v1292_v20 = vld [vmem:[%s1701_s26 + $0x80] ss:$8 sps:$4 sm:$0xff]   ;;  %v1293_v21 = vld [vmem:[%s1701_s26 + $0x94] ss:$8 sps:$4 sm:$0xff]  }
  0x77   : > { %574 = vmatprep.subr.bf16.mxu0 %v1272_v5  ;;  %1116 = vmatprep.subr.bf16.mxu1 %v1272_v5  ;;  %v1295_v22 = vld [vmem:[%s1701_s26 + $0x90] ss:$8 sps:$4 sm:$0xff]   ;;  %v1296_v23 = vld [vmem:[%s1701_s26 + $0xa4] ss:$8 sps:$4 sm:$0xff]   ;;  %v1298_v24 = vld [vmem:[%s1701_s26 + $0xa0] ss:$8 sps:$4 sm:$0xff]  }
  0x78   : > { %602 = vmatprep.mubr.bf16.mxu0 %v1316_v14  ;;  %v1299_v25 = vld [vmem:[%s1701_s26 + $0xb4] ss:$8 sps:$4 sm:$0xff]   ;;  %v1301_v26 = vld [vmem:[%s1701_s26 + $0xb0] ss:$8 sps:$4 sm:$0xff]   ;;  %v1302_v27 = vld [vmem:[%s1701_s26 + $0xc4] ss:$8 sps:$4 sm:$0xff]  }
  0x79   : > { %v1304_v28 = vld [vmem:[%s1701_s26 + $0xc0] ss:$8 sps:$4 sm:$0xff]   ;;  %v1305_v29 = vld [vmem:[%s1701_s26 + $0xd4] ss:$8 sps:$4 sm:$0xff]   ;;  %v1307_v30 = vld [vmem:[%s1701_s26 + $0xd0] ss:$8 sps:$4 sm:$0xff]  }
  0x7a   : > { %575 = vmatpush1.bf16.msra.mxu0 %v1274_v6  ;;  %1132 = vmatpush1.bf16.msra.mxu1 %v1274_v6  ;;  %v1308_v31 = vld [vmem:[%s1701_s26 + $0xe4] ss:$8 sps:$4 sm:$0xff]   ;;  %v1310_v32 = vld [vmem:[%s1701_s26 + $0xe0] ss:$8 sps:$4 sm:$0xff]   ;;  %v1311_v33 = vld [vmem:[%s1701_s26 + $0xf4] ss:$8 sps:$4 sm:$0xff]  }
  0x7b   : > { %576 = vmatprep.subr.bf16.mxu0 %v1275_v7  ;;  %1117 = vmatprep.subr.bf16.mxu1 %v1275_v7  ;;  %v1313_v34 = vld [vmem:[%s1701_s26 + $0xf0] ss:$8 sps:$4 sm:$0xff]   ;;  %v1314_v35 = vld [vmem:[%s1690_s15] ss:$8 sps:$4 sm:$0xff]   ;;  %v1320_v37 = vld [vmem:[%s1690_s15 + $0x14] ss:$8 sps:$4 sm:$0xff]  }
  0x7c   : > { %v1317_v36 = vld [vmem:[%s1690_s15 + $0x30] ss:$8 sps:$4 sm:$0xff]   ;;  %v1322_v38 = vld [vmem:[%s1690_s15 + $0x44] ss:$8 sps:$4 sm:$0xff]   ;;  %v1325_v40 = vld [vmem:[%s1690_s15 + $0x40] ss:$8 sps:$4 sm:$0xff]  }
  0x7d   : > { %v1324_v39 = vld [vmem:[%s1690_s15 + $0x10] ss:$8 sps:$4 sm:$0xff]   ;;  %v1326_v41 = vld [vmem:[%s1690_s15 + $0x24] ss:$8 sps:$4 sm:$0xff]   ;;  %v1328_v42 = vld [vmem:[%s1690_s15 + $0x54] ss:$8 sps:$4 sm:$0xff]  }
  0x7e   : > { %577 = vmatpush1.bf16.msra.mxu0 %v1277_v8  ;;  %1133 = vmatpush1.bf16.msra.mxu1 %v1277_v8  ;;  %v1330_v43 = vld [vmem:[%s1690_s15 + $0x20] ss:$8 sps:$4 sm:$0xff]   ;;  %v1331_v44 = vld [vmem:[%s1690_s15 + $0x50] ss:$8 sps:$4 sm:$0xff]   ;;  %v1763_v46 = vshrl.u32 %v340_v45, 7  ;;  %p1102_p4 = scmp.eq.s32.totalorder %s1470_s18, 1 }
  0x7f   : > { %578 = vmatprep.subr.bf16.mxu0 %v1278_v9  ;;  %1118 = vmatprep.subr.bf16.mxu1 %v1278_v9  ;;  %v338_v48 = vld [vmem:[%s286_s28] sm:$0x3]  ;;  %vm761_vm0 = vcmask (!%p1102_p4), 1041409   ;;  %vm763_vm1 = vcmask (!%p1102_p4), 1043459   ;;  %vm765_vm2 = vcmask (!%p1102_p4), 1045509   ;;  %vm767_vm3 = vcmask (!%p1102_p4), 1047559  }
  0x80   : > { %v342_v47 = vsub.s32 0, %v1763_v46  ;;  %v346_v49 = vsub.s32 1, %v1763_v46 }
  0x82   : > { %579 = vmatpush1.bf16.msra.mxu0 %v1280_v10  ;;  %1134 = vmatpush1.bf16.msra.mxu1 %v1280_v10  ;;  %v1772_v50 = vrot.slane %v338_v48, %v342_v47  ;;  %v1774_v51 = vrot.slane %v338_v48, %v346_v49 }
  0x83   : > { %580 = vmatprep.subr.bf16.mxu0 %v1281_v11  ;;  %1119 = vmatprep.subr.bf16.mxu1 %v1281_v11 }
  0x86   : > { %581 = vmatpush1.bf16.msra.mxu0 %v1283_v12  ;;  %1135 = vmatpush1.bf16.msra.mxu1 %v1283_v12 }
  0x87   : > { %582 = vmatprep.subr.bf16.mxu0 %v1284_v13  ;;  %1120 = vmatprep.subr.bf16.mxu1 %v1284_v13 }
  0x8a   : > { %583 = vmatpush1.bf16.msra.mxu0 %v1286_v15  ;;  %1136 = vmatpush1.bf16.msra.mxu1 %v1286_v15 }
  0x8b   : > { %584 = vmatprep.subr.bf16.mxu0 %v1287_v17  ;;  %1121 = vmatprep.subr.bf16.mxu1 %v1287_v17 }
  0x8e   : > { %585 = vmatpush1.bf16.msra.mxu0 %v1289_v18  ;;  %1137 = vmatpush1.bf16.msra.mxu1 %v1289_v18 }
  0x8f   : > { %586 = vmatprep.subr.bf16.mxu0 %v1290_v19  ;;  %1122 = vmatprep.subr.bf16.mxu1 %v1290_v19 }
  0x92   : > { %587 = vmatpush1.bf16.msra.mxu0 %v1292_v20  ;;  %1138 = vmatpush1.bf16.msra.mxu1 %v1292_v20 }
  0x93   : > { %588 = vmatprep.subr.bf16.mxu0 %v1293_v21  ;;  %1123 = vmatprep.subr.bf16.mxu1 %v1293_v21 }
  0x96   : > { %589 = vmatpush1.bf16.msra.mxu0 %v1295_v22  ;;  %1139 = vmatpush1.bf16.msra.mxu1 %v1295_v22 }
  0x97   : > { %590 = vmatprep.subr.bf16.mxu0 %v1296_v23  ;;  %1124 = vmatprep.subr.bf16.mxu1 %v1296_v23 }
  0x9a   : > { %591 = vmatpush1.bf16.msra.mxu0 %v1298_v24  ;;  %1140 = vmatpush1.bf16.msra.mxu1 %v1298_v24 }
  0x9b   : > { %592 = vmatprep.subr.bf16.mxu0 %v1299_v25  ;;  %1125 = vmatprep.subr.bf16.mxu1 %v1299_v25 }
  0x9e   : > { %593 = vmatpush1.bf16.msra.mxu0 %v1301_v26  ;;  %1141 = vmatpush1.bf16.msra.mxu1 %v1301_v26 }
  0x9f   : > { %594 = vmatprep.subr.bf16.mxu0 %v1302_v27  ;;  %1126 = vmatprep.subr.bf16.mxu1 %v1302_v27 }
  0xa2   : > { %595 = vmatpush1.bf16.msra.mxu0 %v1304_v28  ;;  %1142 = vmatpush1.bf16.msra.mxu1 %v1304_v28 }
  0xa3   : > { %596 = vmatprep.subr.bf16.mxu0 %v1305_v29  ;;  %1127 = vmatprep.subr.bf16.mxu1 %v1305_v29 }
  0xa6   : > { %597 = vmatpush1.bf16.msra.mxu0 %v1307_v30  ;;  %1143 = vmatpush1.bf16.msra.mxu1 %v1307_v30 }
  0xa7   : > { %598 = vmatprep.subr.bf16.mxu0 %v1308_v31  ;;  %1128 = vmatprep.subr.bf16.mxu1 %v1308_v31 }
  0xaa   : > { %599 = vmatpush1.bf16.msra.mxu0 %v1310_v32  ;;  %1144 = vmatpush1.bf16.msra.mxu1 %v1310_v32 }
  0xab   : > { %600 = vmatprep.subr.bf16.mxu0 %v1311_v33  ;;  %1129 = vmatprep.subr.bf16.mxu1 %v1311_v33 }
  0xae   : > { %601 = vmatpush1.bf16.msra.mxu0 %v1313_v34  ;;  %1145 = vmatpush1.bf16.msra.mxu1 %v1313_v34 }
  0xb1   : > { %603 = vmatmul.mubr.bf16.vlgmr.msra.gmra.mrb[0].mxu0 %v1314_v35  ;;  %633 = vmatmul.mubr.bf16.vlgmr.msra.gmra.mrb[0].mxu1 %v1317_v36 }
  0xb2   : > { %612 = vmatprep.mubr.bf16.mxu0 %v1320_v37  ;;  %642 = vmatprep.mubr.bf16.mxu1 %v1322_v38 }
  0xb9   : > { %613 = vmatmul.mubr.bf16.gmra.mrb[4].mxu0 %v1324_v39  ;;  %643 = vmatmul.mubr.bf16.gmra.mrb[4].mxu1 %v1325_v40 }
  0xba   : > { %622 = vmatprep.mubr.bf16.mxu0 %v1326_v41  ;;  %652 = vmatprep.mubr.bf16.mxu1 %v1328_v42 }
  0xc1   : > { %623 = vmatmul.mubr.bf16.gmra.mrb[8].mxu0 %v1330_v43  ;;  %653 = vmatmul.mubr.bf16.gmra.mrb[8].mxu1 %v1331_v44 }
 0x184   : > { %v604_v52 = vpop.f32.mrb[0].mxu0  ;;  %v634_v53 = vpop.f32.mrb[0].mxu1 }
 0x185   : > { %v1777_v54 = vadd.f32 %v604_v52, %v1772_v50  ;;  %v1780_v55 = vadd.f32 %v634_v53, %v1772_v50  ;;  %v606_v56 = vpop.f32.mrb[1].mxu0  ;;  %v636_v57 = vpop.f32.mrb[1].mxu1 }
 0x186   : > { %v1783_v58 = vadd.f32 %v606_v56, %v1774_v51  ;;  %v1786_v59 = vadd.f32 %v636_v57, %v1774_v51  ;;  %v608_v60 = vpop.f32.mrb[2].mxu0  ;;  %v638_v61 = vpop.f32.mrb[2].mxu1 }
 0x187   : > { %v663_v62 = vmax.f32 %v1777_v54, 0.0  ;;  %v675_v63 = vmax.f32 %v1780_v55, 0.0  ;;  %v1791_v0 = vadd.f32 %v608_v60, %v1772_v50  ;;  %v1794_v1 = vadd.f32 %v638_v61, %v1772_v50  ;;  %v610_v2 = vpop.f32.mrb[3].mxu0  ;;  %v640_v3 = vpop.f32.mrb[3].mxu1 }
 0x188   : > { %v664_v4 = vmax.f32 %v1783_v58, 0.0  ;;  %v676_v5 = vmax.f32 %v1786_v59, 0.0  ;;  %v1799_v6 = vadd.f32 %v610_v2, %v1774_v51  ;;  %v1802_v7 = vadd.f32 %v640_v3, %v1774_v51 }
 0x189   : > { %v665_v8 = vmax.f32 %v1791_v0, 0.0  ;;  %v677_v9 = vmax.f32 %v1794_v1, 0.0 }
 0x18a   : > { %v666_v10 = vmax.f32 %v1799_v6, 0.0  ;;  %v678_v11 = vmax.f32 %v1802_v7, 0.0 }
 0x18c   : > { %v614_v12 = vpop.f32.mrb[4].mxu0  ;;  %v644_v13 = vpop.f32.mrb[4].mxu1 }
 0x18d   : > { %v1809_v14 = vadd.f32 %v614_v12, %v1772_v50  ;;  %v1812_v15 = vadd.f32 %v644_v13, %v1772_v50  ;;  %v616_v16 = vpop.f32.mrb[5].mxu0  ;;  %v646_v17 = vpop.f32.mrb[5].mxu1 }
 0x18e   : > { %v1815_v18 = vadd.f32 %v616_v16, %v1774_v51  ;;  %v1818_v19 = vadd.f32 %v646_v17, %v1774_v51  ;;  %v618_v20 = vpop.f32.mrb[6].mxu0  ;;  %v648_v21 = vpop.f32.mrb[6].mxu1  ;;  %v692_v16 = vadd.f32 (!%p1102_p4), %v665_v8, %v663_v62  ;;  %v714_v17 = vadd.f32 (!%p1102_p4), %v677_v9, %v675_v63 }
 0x18f   : > { %v667_v22 = vmax.f32 %v1809_v14, 0.0  ;;  %v679_v23 = vmax.f32 %v1812_v15, 0.0  ;;  %v1823_v24 = vadd.f32 %v618_v20, %v1772_v50  ;;  %v1826_v25 = vadd.f32 %v648_v21, %v1772_v50  ;;  %v620_v26 = vpop.f32.mrb[7].mxu0  ;;  %v650_v27 = vpop.f32.mrb[7].mxu1 }
 0x190   : > { %v668_v28 = vmax.f32 %v1815_v18, 0.0  ;;  %v680_v29 = vmax.f32 %v1818_v19, 0.0  ;;  %v1831_v30 = vadd.f32 %v620_v26, %v1774_v51  ;;  %v1834_v31 = vadd.f32 %v650_v27, %v1774_v51 }
 0x191   : > { %v2080_v32 = vmax.f32 %v1823_v24, 0.0  ;;  %v2077_v33 = vmax.f32 %v1826_v25, 0.0  ;;  %v725_v20 = vadd.f32 (!%p1102_p4), %v678_v11, %v676_v5  ;;  %v693_v21 = vadd.f32 (!%p1102_p4), %v692_v16, %v667_v22 }
 0x192   : > { %v2079_v34 = vmax.f32 %v1831_v30, 0.0  ;;  %v2075_v35 = vmax.f32 %v1834_v31, 0.0  ;;  %v715_v27 = vadd.f32 (!%p1102_p4), %v714_v17, %v679_v23 }
 0x194   : > { %v624_v36 = vpop.f32.mrb[8].mxu0  ;;  %v654_v37 = vpop.f32.mrb[8].mxu1  ;;  %690 = sbr.rel (%p1102_p4) target bundleno = 442 (0x1ba), region = 48 }
 0x195   : > { %v1841_v38 = vadd.f32 %v624_v36, %v1772_v50  ;;  %v1844_v39 = vadd.f32 %v654_v37, %v1772_v50  ;;  %v626_v40 = vpop.f32.mrb[9].mxu0  ;;  %v656_v41 = vpop.f32.mrb[9].mxu1  ;;  %v726_v36 = vadd.f32 (!%p1102_p4), %v725_v20, %v680_v29  ;;  %v694_v37 = vadd.f32 (!%p1102_p4), %v693_v21, %v2080_v32 }
 0x196   : > { %v1847_v42 = vadd.f32 %v626_v40, %v1774_v51  ;;  %v1850_v43 = vadd.f32 %v656_v41, %v1774_v51  ;;  %v628_v44 = vpop.f32.mrb[10].mxu0  ;;  %v658_v45 = vpop.f32.mrb[10].mxu1  ;;  %v716_v41 = vadd.f32 (!%p1102_p4), %v715_v27, %v2077_v33 }
 0x197   : > { %v2073_v47 = vmax.f32 %v1841_v38, 0.0  ;;  %v2069_v48 = vmax.f32 %v1844_v39, 0.0  ;;  %v1855_v49 = vadd.f32 %v628_v44, %v1772_v50  ;;  %v1858_v52 = vadd.f32 %v658_v45, %v1772_v50  ;;  %v630_v53 = vpop.f32.mrb[11].mxu0  ;;  %v660_v56 = vpop.f32.mrb[11].mxu1 }
 0x198   : > { %v2071_v57 = vmax.f32 %v1847_v42, 0.0  ;;  %v2070_v60 = vmax.f32 %v1850_v43, 0.0  ;;  %v1863_v61 = vadd.f32 %v630_v53, %v1774_v51  ;;  %v1866_v2 = vadd.f32 %v660_v56, %v1774_v51 }
 0x199   : > { %v2072_v3 = vmax.f32 %v1855_v49, 0.0  ;;  %v2076_v12 = vmax.f32 %v1858_v52, 0.0  ;;  %v703_v51 = vadd.f32 (!%p1102_p4), %v666_v10, %v664_v4  ;;  %v727_v44 = vadd.f32 (!%p1102_p4), %v726_v36, %v2075_v35 }
 0x19a   : > { %v2074_v13 = vmax.f32 %v1863_v61, 0.0  ;;  %v2078_v50 = vmax.f32 %v1866_v2, 0.0  ;;  %v695_v45 = vadd.f32 (!%p1102_p4), %v694_v37, %v2073_v47  ;;  %v717_v56 = vadd.f32 (!%p1102_p4), %v716_v41, %v2069_v48 }
 0x19b   : > { %v704_v26 = vadd.f32 %v703_v51, %v668_v28  ;;  %v728_v16 = vadd.f32 %v727_v44, %v2070_v60 }
 0x19c   : > { %v696_v51 = vadd.f32 %v695_v45, %v2072_v3  ;;  %v718_v20 = vadd.f32 %v717_v56, %v2076_v12 }
 0x19d   : > { %v705_v40 = vadd.f32 %v704_v26, %v2079_v34  ;;  %v729_v21 = vadd.f32 %v728_v16, %v2078_v50 }
 0x19e   : > { %v697_v26 = vrot.slane %v696_v51, 4  ;;  %v719_v36 = vrot.slane %v718_v20, 4 }
 0x19f   : > { %v706_v53 = vadd.f32 %v705_v40, %v2071_v57  ;;  %v730_v37 = vrot.slane %v729_v21, 4  ;;  %v1499_v40 = vmov 1983009808  }
 0x1a0   : > { %v742_v41 = vunpack.c.l.s4 %v1499_v40  ;;  %v698_v48 = vadd.f32 %v697_v26, %v696_v51  ;;  %v720_v60 = vadd.f32 %v719_v36, %v718_v20 }
 0x1a1   : > { %v707_v17 = vadd.f32 %v706_v53, %v2074_v13  ;;  %v731_v57 = vadd.f32 %v730_v37, %v729_v21 }
 0x1a2   : > { %v699_v45 = vrot.slane %v698_v48, 2  ;;  %v721_v47 = vrot.slane %v720_v60, 2  ;;  %v743_v13 = vunpack.c.0.s8 %v742_v41 }
 0x1a3   : > { %v708_v27 = vrot.slane %v707_v17, 4  ;;  %v732_v53 = vrot.slane %v731_v57, 2 }
 0x1a4   : > { %v700_v35 = vadd.f32 %v699_v45, %v698_v48  ;;  %v722_v12 = vadd.f32 %v721_v47, %v720_v60  ;;  %v746_v40 = vsub.s32 %v743_v13, %v1763_v46 }
 0x1a5   : > { %v709_v44 = vadd.f32 %v708_v27, %v707_v17  ;;  %v733_v33 = vadd.f32 %v732_v53, %v731_v57  ;;  %v691_v57 = vld [vmem:[%s1715_s24] sm:$0xf] }
 0x1a6   : > { %v701_v16 = vrot.slane %v700_v35, 1  ;;  %v723_v34 = vrot.slane %v722_v12, 1 }
 0x1a7   : > { %v710_v3 = vrot.slane %v709_v44, 2  ;;  %v734_v32 = vrot.slane %v733_v33, 1 }
 0x1a8   : > { %v702_v51 = vadd.f32 %v701_v16, %v700_v35  ;;  %v724_v20 = vadd.f32 %v723_v34, %v722_v12 }
 0x1a9   : > { %v711_v56 = vadd.f32 %v710_v3, %v709_v44  ;;  %v735_v21 = vadd.f32 %v734_v32, %v733_v33 }
 0x1ab   : > { %v712_v50 = vrot.slane %v711_v56, 1  ;;  %v748_v27 = vcombine.low %v724_v20, %v735_v21 }
 0x1ad   : > { %v713_v17 = vadd.f32 %v712_v50, %v711_v56  ;;  %v755_v37 = vrot.slane %v748_v27, %v746_v40 }
 0x1af   : > { %v740_v26 = vcombine.low %v702_v51, %v713_v17  ;;  %v760_v48 = vrot.slane %v755_v37, 7 }
 0x1b1   : > { %v747_v36 = vrot.slane %v740_v26, %v746_v40 }
 0x1b3   : > { %v762_v47 = vsel %vm761_vm0, %v760_v48, %v747_v36 }
 0x1b4   : > { %v764_v60 = vsel %vm763_vm1, %v760_v48, %v762_v47 }
 0x1b5   : > { %v766_v3 = vsel %vm765_vm2, %v760_v48, %v764_v60 }
 0x1b6   : > { %v768_v41 = vsel %vm767_vm3, %v760_v48, %v766_v3 }
 0x1b7   : > { %v770_v13 = vadd.f32 %v768_v41, %v691_v57 }
 0x1b9   : > { %771 = vst [vmem:[%s1715_s24] sm:$0xf] %v770_v13 }
 0x1ba PF: > { %p1103_p5 = scmp.ne.s32.totalorder %s1470_s18, 1 }
 0x1bb   : > { %s776_s30 = smul.u32 (!%p1103_p5), 48, %s1470_s18  ;;  %v779_v32 = vadd.s32 (!%p1103_p5), 8, %v1763_v46  ;;  %v780_v33 = vadd.s32 (!%p1103_p5), 16, %v1763_v46  ;;  %v781_v34 = vadd.s32 (!%p1103_p5), 24, %v1763_v46  ;;  %v782_v12 = vadd.s32 (!%p1103_p5), 32, %v1763_v46 }
 0x1bc   : > { %775 = sbr.rel (%p1103_p5) target bundleno = 490 (0x1ea), region = 52  ;;  %v783_v50 = vadd.s32 (!%p1103_p5), 40, %v1763_v46  ;;  %v2098_v1 = vmax.f32 (!%p1103_p5), %v1823_v24, 0.0  ;;  %v2102_v19 = vmax.f32 (!%p1103_p5), %v1841_v38, 0.0  ;;  %v2106_v38 = vmax.f32 (!%p1103_p5), %v1855_v49, 0.0 }
 0x1bd   : > { %v784_v35 = vstv (!%p1103_p5), %s776_s30  ;;  %vm903_vm10 = vcmask (!%p1103_p5), 1041409   ;;  %vm905_vm11 = vcmask (!%p1103_p5), 1043459   ;;  %vm907_vm12 = vcmask (!%p1103_p5), 1045509  }
 0x1be   : > { %v785_v44 = vadd.s32 (!%p1103_p5), %v784_v35, %v1763_v46  ;;  %v786_v45 = vadd.s32 (!%p1103_p5), %v784_v35, %v779_v32  ;;  %v787_v53 = vadd.s32 (!%p1103_p5), %v784_v35, %v780_v33  ;;  %v788_v56 = vadd.s32 (!%p1103_p5), %v784_v35, %v781_v34 }
 0x1bf   : > { %v789_v16 = vadd.s32 (!%p1103_p5), %v784_v35, %v782_v12  ;;  %v790_v40 = vadd.s32 (!%p1103_p5), %v784_v35, %v783_v50  ;;  %vm909_vm13 = vcmask (!%p1103_p5), 1047559  }
 0x1c0   : > { %vm791_vm4 = vcmp.lt.s32.totalorder (!%p1103_p5), %v785_v44, 64  ;;  %vm792_vm5 = vcmp.lt.s32.totalorder (!%p1103_p5), %v786_v45, 64  ;;  %vm793_vm6 = vcmp.lt.s32.totalorder (!%p1103_p5), %v787_v53, 64  ;;  %vm794_vm7 = vcmp.lt.s32.totalorder (!%p1103_p5), %v788_v56, 64 }
 0x1c1   : > { %v809_v51 = vsel (!%p1103_p5), %vm791_vm4, %v663_v62, 0.0  ;;  %v810_v17 = vsel (!%p1103_p5), %vm791_vm4, %v664_v4, 0.0  ;;  %v811_v20 = vsel (!%p1103_p5), %vm792_vm5, %v665_v8, 0.0  ;;  %v812_v21 = vsel (!%p1103_p5), %vm792_vm5, %v666_v10, 0.0 }
 0x1c2   : > { %v821_v26 = vsel (!%p1103_p5), %vm791_vm4, %v675_v63, 0.0  ;;  %v822_v27 = vsel (!%p1103_p5), %vm791_vm4, %v676_v5, 0.0  ;;  %v823_v36 = vsel (!%p1103_p5), %vm792_vm5, %v677_v9, 0.0  ;;  %v824_v54 = vsel (!%p1103_p5), %vm792_vm5, %v678_v11, 0.0 }
 0x1c3   : > { %vm795_vm8 = vcmp.lt.s32.totalorder %v789_v16, 64  ;;  %vm796_vm9 = vcmp.lt.s32.totalorder %v790_v40, 64  ;;  %v813_v58 = vsel %vm793_vm6, %v667_v22, 0.0  ;;  %v814_v62 = vsel %vm793_vm6, %v668_v28, 0.0 }
 0x1c4   : > { %v825_v55 = vsel %vm793_vm6, %v679_v23, 0.0  ;;  %v826_v59 = vsel %vm793_vm6, %v680_v29, 0.0  ;;  %v834_v63 = vadd.f32 %v811_v20, %v809_v51  ;;  %v845_v0 = vadd.f32 %v812_v21, %v810_v17 }
 0x1c5   : > { %v815_v4 = vsel %vm794_vm7, %v2098_v1, 0.0  ;;  %v2099_v5 = vmax.f32 %v1831_v30, 0.0  ;;  %v856_v7 = vadd.f32 %v823_v36, %v821_v26  ;;  %v867_v8 = vadd.f32 %v824_v54, %v822_v27 }
 0x1c6   : > { %v2100_v9 = vmax.f32 %v1826_v25, 0.0  ;;  %v2101_v11 = vmax.f32 %v1834_v31, 0.0  ;;  %v835_v15 = vadd.f32 %v834_v63, %v813_v58  ;;  %v846_v18 = vadd.f32 %v845_v0, %v814_v62 }
 0x1c7   : > { %v816_v6 = vsel %vm794_vm7, %v2099_v5, 0.0  ;;  %v817_v22 = vsel %vm795_vm8, %v2102_v19, 0.0  ;;  %v2103_v23 = vmax.f32 %v1847_v42, 0.0  ;;  %v857_v28 = vadd.f32 %v856_v7, %v825_v55 }
 0x1c8   : > { %v827_v10 = vsel %vm794_vm7, %v2100_v9, 0.0  ;;  %v828_v14 = vsel %vm794_vm7, %v2101_v11, 0.0  ;;  %v868_v29 = vadd.f32 %v867_v8, %v826_v59  ;;  %v2104_v25 = vmax.f32 %v1844_v39, 0.0 }
 0x1c9   : > { %v818_v24 = vsel %vm795_vm8, %v2103_v23, 0.0  ;;  %v2105_v31 = vmax.f32 %v1850_v43, 0.0  ;;  %v836_v48 = vadd.f32 %v835_v15, %v815_v4  ;;  %v847_v47 = vadd.f32 %v846_v18, %v816_v6 }
 0x1ca   : > { %v829_v30 = vsel %vm795_vm8, %v2104_v25, 0.0  ;;  %v819_v57 = vsel %vm796_vm9, %v2106_v38, 0.0  ;;  %v2107_v42 = vmax.f32 %v1863_v61, 0.0  ;;  %v858_v3 = vadd.f32 %v857_v28, %v827_v10 }
 0x1cb   : > { %v830_v37 = vsel %vm795_vm8, %v2105_v31, 0.0  ;;  %v869_v41 = vadd.f32 %v868_v29, %v828_v14  ;;  %v2108_v39 = vmax.f32 %v1858_v52, 0.0  ;;  %v2109_v43 = vmax.f32 %v1866_v2, 0.0 }
 0x1cc   : > { %v820_v60 = vsel %vm796_vm9, %v2107_v42, 0.0  ;;  %v837_v33 = vadd.f32 %v836_v48, %v817_v22  ;;  %v848_v34 = vadd.f32 %v847_v47, %v818_v24  ;;  %v859_v35 = vadd.f32 %v858_v3, %v829_v30  ;;  %v833_v22 = vld [vmem:[%s1715_s24] sm:$0xf] }
 0x1cd   : > { %v831_v13 = vsel %vm796_vm9, %v2108_v39, 0.0  ;;  %v832_v32 = vsel %vm796_vm9, %v2109_v43, 0.0  ;;  %v870_v49 = vadd.f32 %v869_v41, %v830_v37  ;;  %v1500_v21 = vmov 1983009808  }
 0x1ce   : > { %v838_v12 = vadd.f32 %v837_v33, %v819_v57  ;;  %v849_v50 = vadd.f32 %v848_v34, %v820_v60  ;;  %v860_v44 = vadd.f32 %v859_v35, %v831_v13  ;;  %v884_v2 = vunpack.c.l.s4 %v1500_v21 }
 0x1cf   : > { %v871_v61 = vadd.f32 %v870_v49, %v832_v32 }
 0x1d0   : > { %v839_v45 = vrot.slane %v838_v12, 4  ;;  %v850_v53 = vrot.slane %v849_v50, 4  ;;  %v861_v56 = vrot.slane %v860_v44, 4  ;;  %v885_v59 = vunpack.c.0.s8 %v884_v2 }
 0x1d1   : > { %v872_v16 = vrot.slane %v871_v61, 4 }
 0x1d2   : > { %v840_v51 = vadd.f32 %v839_v45, %v838_v12  ;;  %v851_v52 = vadd.f32 %v850_v53, %v849_v50  ;;  %v862_v17 = vadd.f32 %v861_v56, %v860_v44  ;;  %v888_v9 = vsub.s32 %v885_v59, %v1763_v46 }
 0x1d3   : > { %v873_v20 = vadd.f32 %v872_v16, %v871_v61 }
 0x1d4   : > { %v841_v40 = vrot.slane %v840_v51, 2  ;;  %v852_v26 = vrot.slane %v851_v52, 2  ;;  %v863_v27 = vrot.slane %v862_v17, 2 }
 0x1d5   : > { %v874_v36 = vrot.slane %v873_v20, 2 }
 0x1d6   : > { %v842_v54 = vadd.f32 %v841_v40, %v840_v51  ;;  %v853_v58 = vadd.f32 %v852_v26, %v851_v52  ;;  %v864_v62 = vadd.f32 %v863_v27, %v862_v17 }
 0x1d7   : > { %v875_v55 = vadd.f32 %v874_v36, %v873_v20 }
 0x1d8   : > { %v843_v63 = vrot.slane %v842_v54, 1  ;;  %v854_v0 = vrot.slane %v853_v58, 1  ;;  %v865_v1 = vrot.slane %v864_v62, 1 }
 0x1d9   : > { %v876_v4 = vrot.slane %v875_v55, 1 }
 0x1da   : > { %v844_v5 = vadd.f32 %v843_v63, %v842_v54  ;;  %v855_v6 = vadd.f32 %v854_v0, %v853_v58  ;;  %v866_v7 = vadd.f32 %v865_v1, %v864_v62 }
 0x1db   : > { %v877_v8 = vadd.f32 %v876_v4, %v875_v55 }
 0x1dc   : > { %v882_v10 = vcombine.low %v844_v5, %v855_v6 }
 0x1dd   : > { %v890_v11 = vcombine.low %v866_v7, %v877_v8 }
 0x1de   : > { %v889_v14 = vrot.slane %v882_v10, %v888_v9 }
 0x1df   : > { %v897_v15 = vrot.slane %v890_v11, %v888_v9 }
 0x1e1   : > { %v902_v18 = vrot.slane %v897_v15, 7 }
 0x1e3   : > { %v904_v19 = vsel %vm903_vm10, %v902_v18, %v889_v14 }
 0x1e4   : > { %v906_v23 = vsel %vm905_vm11, %v902_v18, %v904_v19 }
 0x1e5   : > { %v908_v24 = vsel %vm907_vm12, %v902_v18, %v906_v23 }
 0x1e6   : > { %v910_v28 = vsel %vm909_vm13, %v902_v18, %v908_v24 }
 0x1e7   : > { %v912_v29 = vadd.f32 %v910_v28, %v833_v22 }
 0x1e9   : > { %913 = vst [vmem:[%s1715_s24] sm:$0xf] %v912_v29 }
 0x1ea PF: > { %s1112_s18 = sshll.u32 %s1474_s19, 6  ;;  %s929_s17 = sshll.u32 %s1715_s24, 4  ;;  %s930_s17 = int_to_ptr.vmem [resolvable:$true] %s929_s17 }
 0x1eb   : > { %s1999_s6 = scalar_lea.hbm %s2060_s3, %s1112_s18  ;;  %s915_s29 = scalar_lea.sflag [#allocation4], %s1697_s12 }
 0x1ec   : > { %s1360_s7 = scalar_lea.vmem %s930_s17, 64  ;;  %p2110_p6 = scmp.ne.s32.totalorder %s2093_s10, 0 }
 0x1ed   : > { %p1361_p1 = scmp.ne.s32.totalorder %s930_s17, %s1360_s7  ;;  %s1501_s15 = smov [#allocation7]  }
 0x1ee   : > { %s1364_s8 = sshll.u32 %s1501_s15, 4  ;;  %s1365_s8 = int_to_ptr.vmem [resolvable:$false] %s1364_s8 }
 0x1ef   : > { %p1362_p2 = pnand %p1361_p1, %p2110_p6  ;;  %s1366_s25 = scalar_lea.vmem %s1365_s8, 128 }
 0x1f0   : > { %p1367_p9 = scmp.lt.s32.totalorder %s930_s17, %s1365_s8  ;;  %p1368_p10 = scmp.lt.s32.totalorder %s1366_s25, %s1360_s7 }
 0x1f1   : > { %p1363_p3 = pneg %p1362_p2 }
 0x1f2   : > { %p1369_p7 = por %p1368_p10, %p1367_p9 }
 0x1f4   : > { %p1370_p11 = pnand %p1369_p7, %p1363_p3 }
 0x1f6   : > { %1373 = shalt.err (!%p1370_p11)
}
 0x1f7   : > { %s1374_s19 = scalar_lea.hbm %s1999_s6, 64  ;;  %s1378_s0 = scalar_lea.hbm %s2060_s3, 128 }
 0x1f8   : > { %p1375_p0 = scmp.ne.s32.totalorder %s1999_s6, %s1374_s19  ;;  %p1379_p13 = scmp.lt.u32.totalorder %s1999_s6, %s2060_s3 }
 0x1f9   : > { %p1380_p4 = scmp.lt.u32.totalorder %s1378_s0, %s1374_s19  ;;  %p1382_p1 = scmp.lt.u32.totalorder %s1374_s19, %s1999_s6 }
 0x1fa   : > { %p1376_p12 = pnand %p1375_p0, %p2110_p6 }
 0x1fb   : > { %p1381_p5 = por %p1380_p4, %p1379_p13 }
 0x1fc   : > { %p1377_p8 = pneg %p1376_p12 }
 0x1fd   : > { %p1383_p2 = por %p1382_p1, %p1381_p5 }
 0x1ff   : > { %p1384_p3 = pnand %p1383_p2, %p1377_p8 }
 0x201   : > { %1387 = shalt.err (!%p1384_p3)
}
 0x202   : > { %1159 = dma.vmem_to_hbm [thread:$0]  (%p2110_p6), %s930_s17, 64, %s1999_s6, %s915_s29  }
 0x203 PF: > { %s2111_s23 = sld [smem:[#allocation14_spill]]  ;;  %s2112_s28 = sld [smem:[#allocation21_spill]] }
 0x204   : > { %p1165_p9 = scmp.ge.s32.totalorder %s1486_s22, 2 }
 0x209   : > { %s941_s24 = sand.u32 1, %s2111_s23   ;;  %p2113_p10 = scmp.ne.s32.totalorder %s2112_s28, 0 }
 0x20a   : > { %s942_s9 = scalar_lea.sflag [#allocation4], %s941_s24 }
 0x20b   : > { %p1162_p7 = pnand %p1165_p9, %p2113_p10 }
 0x20d   : > { %1441 = dma.done.wait (!%p1162_p7), %s942_s9, 64  }
 0x20e   : > { %1443 = vsyncadd (!%p1162_p7), %s942_s9, 4294967232  ;;  %s22_s22 = sadd.s32 1, %s1486_s22   ;;  %s2114_s5 = sld [smem:[#allocation20_spill]] }
 0x20f   : > { %p19_p11 = scmp.ge.s32.totalorder %s22_s22, 6   ;;  %s2115_s10 = sld [smem:[#allocation15_spill]] }
 0x210   : > { %s2116_s17 = sld [smem:[#allocation19_spill]]  ;;  %s2117_s18 = sld [smem:[#allocation16_spill]] }
 0x211   : > { %s2118_s20 = sld [smem:[#allocation17_spill]]  ;;  %s2119_s30 = sld [smem:[#allocation18_spill]] }
 0x212   : > { %s2120_s12 = smov %s1450_s13  ;;  %s2121_s13 = smov %s1454_s14 }
 0x213   : > { %s2123_s15 = smov %s1462_s16  ;;  %s2125_s19 = smov %s1482_s21 }
 0x214   : > { %s2122_s14 = smov %s2114_s5  ;;  %21 = sbr.rel (!%p19_p11) target bundleno = 13 (0xd), region = 110 }
 0x215   : > { %s2124_s16 = smov %s2115_s10 }
 0x217   : > { %s2126_s21 = smov %s2119_s30 }
 0x21b   :  { %947 = vsyncpa [#allocation3], 1 }
 0x21c   :  { %949 = vsyncpa [#allocation3 + $0x1], 1 }
 0x21d   :  { %950 = vsyncpa [#allocation6], 1 }
 0x21e   :  { %952 = vsyncpa [#allocation6 + $0x1], 1 }
 0x21f   :  { %953 = vsyncpa [#allocation4], 1 }
 0x220   :  { %955 = vsyncpa [#allocation4 + $0x1], 1 }

</bundles_post_ra>
